<compile_context>
chip_gen: v7x
topology: tpu7x:2x2x1
jax: 0.10.0
libtpu: 0.0.40
codegen_flags: <defaults>
</compile_context>

<pallas_src>
import functools

import jax
import jax.numpy as jnp
from jax.experimental import pallas as pl
from jax.experimental.pallas import tpu as pltpu

EPS = 1e-5
_TILE_ROW_BUCKETS = (4096, 512, 64, 8)   # packed rows per grid step
_PALLAS_MIN_BATCH = 1024                 # below this, plain XLA beats the launch cost


def _round_up(x, m):
    return -(-x // m) * m


# --------------------------------------------------------------------------
# Pallas kernel: one MXU matmul + one VPU broadcast add, lane-dense in & out.
# --------------------------------------------------------------------------
def _tdm_lidar_kernel(x_ref, circ_ref, bias_ref, out_ref):
    """out = x_packed @ circ_blockdiag + bias_row   (EMA-norm + circular conv, folded)."""
    x = x_ref[...].astype(circ_ref.dtype)
    y = jnp.dot(x, circ_ref[...], preferred_element_type=jnp.float32)
    out_ref[...] = (y + bias_ref[...]).astype(out_ref.dtype)


# --------------------------------------------------------------------------
# Parameter construction (shapes mirror TDMCommon.__init__).
# --------------------------------------------------------------------------
def init_tdm_common_params(num_lidar_samples, key):
    L = num_lidar_samples
    k_w, k_b, k_mu, k_var = jax.random.split(key, 4)
    fan_in = 1 * L  # in_channels * kernel_size
    bound = 1.0 / jnp.sqrt(fan_in)
    return {
        # nn.Conv1d(1, 1, kernel_size=L) -> weight (1,1,L), bias (1,)
        "conv_w": jax.random.uniform(k_w, (1, 1, L), jnp.float32, -bound, bound),
        "conv_b": jax.random.uniform(k_b, (1,), jnp.float32, -bound, bound),
        # EMANormalizer(0.99999, [1, L]) frozen running statistics (no_grad path)
        "mu": 0.1 * jax.random.normal(k_mu, (1, L), jnp.float32),
        "var": 1.0 + jnp.abs(0.1 * jax.random.normal(k_var, (1, L), jnp.float32)),
    }


# --------------------------------------------------------------------------
# One-time precompute: fold EMA stats + bias into a block-diagonal circulant.
# --------------------------------------------------------------------------
def precompute_tdm_lidar_op(params, *, eps=EPS):
    """Call ONCE per parameter set; nothing shape-sized is rebuilt per forward."""
    w = params["conv_w"].reshape(-1).astype(jnp.float32)     # (L,)
    L = int(w.shape[0])
    left_pad = (L - 1) // 2                                  # PyTorch 'same' circular split

    ii = jnp.arange(L)[:, None]
    tt = jnp.arange(L)[None, :]
    circ = w[(ii - tt + left_pad) % L]                       # (L, L):  y = x_norm @ circ

    s = jax.lax.rsqrt(params["var"].reshape(L).astype(jnp.float32) + eps)
    mu = params["mu"].reshape(L).astype(jnp.float32)

    circ_folded = circ * s[:, None]                          # diag(s) @ circ  (exact algebra)
    bias_row = params["conv_b"][0].astype(jnp.float32) - mu @ circ_folded     # (L,)

    # Lane-dense block-diagonal repack: P rows of the batch share one 128-lane row.
    # (On v6e/v7x P could be doubled for K=N=256 MXU shape - marginal, HBM-bound.)
    if L <= 128 and 128 % L == 0:
        P = 128 // L
    else:
        P = 1                                               # odd L: fall back to lane padding
    K = P * L
    N = _round_up(K, 128)                                    # == K in the common case

    blockdiag = jnp.kron(jnp.eye(P, dtype=jnp.float32), circ_folded)   # (K, K)
    if N != K:
        blockdiag = jnp.zeros((K, N), jnp.float32).at[:, :K].set(blockdiag)
    bias_tiled = jnp.zeros((1, N), jnp.float32).at[:, :K].set(jnp.tile(bias_row, P))

    return {
        "circ": blockdiag,            # (K, N) f32, block-diagonal folded circulant
        "bias": bias_tiled,           # (1, N) f32
        "circ_small": circ_folded,    # (L, L) f32, for the small-batch XLA path
        "bias_small": bias_row,       # (L,)   f32
        "L": L, "P": P, "K": K, "N": N,
    }


# --------------------------------------------------------------------------
# pallas_call wrapper (packed batch rows, 1-D "parallel" grid, ragged last block).
# --------------------------------------------------------------------------
def _choose_tile_rows(r_packed):
    # Bucketed (bounded recompiles) and capped so there are >= 2 grid steps when
    # possible: v7x has 2 TensorCores to shard the "parallel" axis across.
    half = max(8, _round_up(-(-r_packed // 2), 8))
    for t in _TILE_ROW_BUCKETS:
        if t <= half:
            return t
    return 8


@functools.partial(jax.jit, static_argnames=("pack", "tile_rows"))
def _lidar_conv_pallas(lidar, circ, bias, pack, tile_rows):
    B, L = lidar.shape
    K, N = circ.shape
    P = pack

    # Pad only to a multiple of 8*P (sublane-aligned packed rows); NOT to tile_rows.
    B_pad = _round_up(B, 8 * P)
    x = lidar.astype(jnp.float32)
    if B_pad != B:
        x = jnp.pad(x, ((0, B_pad - B), (0, 0)))
    R = B_pad // P
    x_packed = x.reshape(R, K)                               # free row-major view

    itemsize = 4
    cost = pl.CostEstimate(
        flops=2 * R * K * N,
        transcendentals=0,
        bytes_accessed=(R * K + K * N + N + R * N) * itemsize,
    )

    out_packed = pl.pallas_call(
        _tdm_lidar_kernel,
        out_shape=jax.ShapeDtypeStruct((R, N), jnp.float32),
        grid=(pl.cdiv(R, tile_rows),),                       # ragged last block allowed
        in_specs=[
            pl.BlockSpec((tile_rows, K), lambda i: (i, 0)),  # packed lidar rows
            pl.BlockSpec((K, N), lambda i: (0, 0)),          # folded block-diag circulant
            pl.BlockSpec((1, N), lambda i: (0, 0)),          # folded bias row
        ],
        out_specs=pl.BlockSpec((tile_rows, N), lambda i: (i, 0)),
        compiler_params=pltpu.CompilerParams(
            dimension_semantics=("parallel",)),              # megacore on v7x
        cost_estimate=cost,
    )(x_packed, circ, bias)

    if N != K:                                               # only for odd L (lane-padded path)
        out_packed = out_packed[:, :K]
    out = out_packed.reshape(B_pad, L)                       # free row-major view
    if B_pad != B:
        out = out[:B]
    return out


def lidar_circular_conv(lidar, lidar_op, *, use_pallas=None):
    """EMA-normalize + circular Conv1d, dispatching small batches to plain XLA."""
    B, L = lidar.shape
    assert L == lidar_op["L"]
    if use_pallas is None:
        use_pallas = B >= _PALLAS_MIN_BATCH
    if not use_pallas:
        # Demo / small-batch path: sub-microsecond matmul; skip the pallas launch.
        return lidar.astype(jnp.float32) @ lidar_op["circ_small"] + lidar_op["bias_small"]
    tile_rows = _choose_tile_rows(_round_up(B, 8 * lidar_op["P"]) // lidar_op["P"])
    return _lidar_conv_pallas(lidar, lidar_op["circ"], lidar_op["bias"],
                              lidar_op["P"], tile_rows)


def _assert_valid_input(x):
    # Debug-only host-side check (forces device->host sync; off on the hot path).
    assert not bool(jnp.isnan(x).any())
    assert not bool(jnp.isinf(x).any())


def tdm_common_forward(lidar_op, self_obs, teammate_obs, opponent_obs, lidar,
                       hp, magazine, alive, opponent_masks,
                       *, check_inputs=False, use_pallas=None):
    """Forward pass of TDMCommon.  `lidar_op` comes from precompute_tdm_lidar_op."""
    if check_inputs:
        # TODO(synk): replace with jax.experimental.checkify (on-device, non-syncing).
        for t in (self_obs, teammate_obs, opponent_obs, lidar,
                  hp, magazine, alive, opponent_masks):
            _assert_valid_input(t)

    lidar_processed = lidar_circular_conv(lidar, lidar_op, use_pallas=use_pallas)

    return (self_obs, teammate_obs, opponent_obs, lidar_processed,
            hp, magazine, alive, opponent_masks)


# --------------------------------------------------------------------------
# Plain-JAX reference of the lidar path (normalize + circular 'same' conv).
# --------------------------------------------------------------------------
def _reference_forward(params, lidar):
    B, L = lidar.shape
    w = params["conv_w"].reshape(L)
    b = params["conv_b"][0]
    left_pad = (L - 1) // 2
    right_pad = (L - 1) - left_pad
    x_norm = (lidar - params["mu"]) / jnp.sqrt(params["var"] + EPS)
    padded = jnp.concatenate(
        [x_norm[:, L - left_pad:], x_norm, x_norm[:, :right_pad]], axis=1)
    out = jnp.stack([padded[:, t:t + L] @ w for t in range(L)], axis=1) + b
    return out


if __name__ == "__main__":
    key = jax.random.PRNGKey(0)
    k_par, k_s, k_t, k_o, k_l, k_hp, k_mag, k_al, k_m = jax.random.split(key, 9)

    B = 8                    # batch
    L = 32                   # num_lidar_samples
    N_OPP = 3                # opponents (pass-through tensors only)

    params = init_tdm_common_params(L, k_par)
    lidar_op = precompute_tdm_lidar_op(params)

    self_obs = jax.random.normal(k_s, (B, 16), jnp.float32)
    teammate_obs = jax.random.normal(k_t, (B, 16), jnp.float32)
    opponent_obs = jax.random.normal(k_o, (B, N_OPP, 16), jnp.float32)
    lidar = jax.random.normal(k_l, (B, L), jnp.float32)
    hp = jax.random.uniform(k_hp, (B, 1), jnp.float32)
    magazine = jax.random.uniform(k_mag, (B, 1), jnp.float32)
    alive = (jax.random.uniform(k_al, (B, 1)) > 0.5).astype(jnp.float32)
    opponent_masks = (jax.random.uniform(k_m, (B, N_OPP)) > 0.5).astype(jnp.float32)

    ref = _reference_forward(params, lidar)

    # --- forced Pallas path at demo scale (exercises the kernel) --------------
    outs = tdm_common_forward(lidar_op, self_obs, teammate_obs, opponent_obs,
                              lidar, hp, magazine, alive, opponent_masks,
                              use_pallas=True)
    outs = jax.tree_util.tree_map(jax.block_until_ready, outs)
    lidar_processed = outs[3]
    assert lidar_processed.shape == lidar.shape
    assert jnp.allclose(lidar_processed, ref, atol=1e-4, rtol=1e-4)
    # pass-throughs unchanged
    assert jnp.array_equal(outs[0], self_obs)
    assert jnp.array_equal(outs[1], teammate_obs)
    assert jnp.array_equal(outs[2], opponent_obs)
    assert jnp.array_equal(outs[4], hp)
    assert jnp.array_equal(outs[5], magazine)
    assert jnp.array_equal(outs[6], alive)
    assert jnp.array_equal(outs[7], opponent_masks)

    # --- auto dispatch at demo scale hits the plain-XLA small-batch path ------
    outs_auto = tdm_common_forward(lidar_op, self_obs, teammate_obs, opponent_obs,
                                   lidar, hp, magazine, alive, opponent_masks)
    out_auto = jax.block_until_ready(outs_auto[3])
    assert jnp.allclose(out_auto, ref, atol=1e-4, rtol=1e-4)

    # --- batch not a multiple of the pack factor: pad + reshape + slice path --
    B2 = 10
    lidar2 = jax.random.normal(jax.random.PRNGKey(7), (B2, L), jnp.float32)
    out2 = jax.block_until_ready(
        lidar_circular_conv(lidar2, lidar_op, use_pallas=True))
    assert out2.shape == (B2, L)
    assert jnp.allclose(out2, _reference_forward(params, lidar2),
                        atol=1e-4, rtol=1e-4)

    # --- larger batch: multi-step grid with a ragged last block ---------------
    B3 = 544                 # packed rows = 136, tile 64 -> grid of 3 (last ragged)
    lidar3 = jax.random.normal(jax.random.PRNGKey(11), (B3, L), jnp.float32)
    out3 = jax.block_until_ready(
        lidar_circular_conv(lidar3, lidar_op, use_pallas=True))
    assert out3.shape == (B3, L)
    assert jnp.allclose(out3, _reference_forward(params, lidar3),
                        atol=1e-4, rtol=1e-4)

    # --- auto dispatch above the threshold also takes the Pallas path ---------
    B4 = 4096                # packed rows = 1024, tile 512 -> grid of 2 ("parallel")
    lidar4 = jax.random.normal(jax.random.PRNGKey(13), (B4, L), jnp.float32)
    out4 = jax.block_until_ready(lidar_circular_conv(lidar4, lidar_op))
    assert out4.shape == (B4, L)
    assert jnp.allclose(out4, _reference_forward(params, lidar4),
                        atol=1e-4, rtol=1e-4)

    print("KERNEL_OK")
</pallas_src>

<mosaic_0001>
module attributes {stable_mosaic.version = 11 : i64} {
  func.func @_tdm_lidar_kernel(%arg0: i32, %arg1: memref<8x128xf32, #tpu.memory_space<vmem>>, %arg2: memref<128x128xf32, #tpu.memory_space<vmem>>, %arg3: memref<1x128xf32, #tpu.memory_space<vmem>>, %arg4: memref<8x128xf32, #tpu.memory_space<vmem>>) attributes {dimension_semantics = [#tpu.dimension_semantics<parallel>], iteration_bounds = array<i64: 1>, scalar_prefetch = 0 : i64, scratch_operands = 0 : i64, tpu.core_type = #tpu.core_type<tc>, window_params = [{transform_indices = @transform_0, window_bounds = array<i64: 8, 128>}, {pipeline_mode = #tpu.pipeline_mode<synchronous>, transform_indices = @transform_1, window_bounds = array<i64: 128, 128>}, {pipeline_mode = #tpu.pipeline_mode<synchronous>, transform_indices = @transform_2, window_bounds = array<i64: 1, 128>}, {transform_indices = @transform_3, window_bounds = array<i64: 8, 128>}]} {
    %c0 = arith.constant 0 : index
    %c0_0 = arith.constant 0 : index
    %0 = vector.load %arg1[%c0, %c0_0] : memref<8x128xf32, #tpu.memory_space<vmem>>, vector<8x128xf32>
    %c0_1 = arith.constant 0 : index
    %c0_2 = arith.constant 0 : index
    %1 = vector.load %arg2[%c0_1, %c0_2] : memref<128x128xf32, #tpu.memory_space<vmem>>, vector<128x128xf32>
    %cst = arith.constant dense<0.000000e+00> : vector<8x128xf32>
    %2 = tpu.matmul %0, %1, %cst {dimension_numbers = #tpu.dot_dimension_numbers<[1], [0], [0], [1], [0, 0, 1, 1], [], []>} : vector<8x128xf32>, vector<128x128xf32>, vector<8x128xf32> -> vector<8x128xf32>
    %c0_3 = arith.constant 0 : index
    %c0_4 = arith.constant 0 : index
    %3 = vector.load %arg3[%c0_3, %c0_4] : memref<1x128xf32, #tpu.memory_space<vmem>>, vector<1x128xf32>
    %4 = vector.broadcast %3 : vector<1x128xf32> to vector<8x128xf32>
    %5 = arith.addf %2, %4 : vector<8x128xf32>
    %c0_5 = arith.constant 0 : index
    %c0_6 = arith.constant 0 : index
    %6 = vector.load %arg4[%c0_5, %c0_6] : memref<8x128xf32, #tpu.memory_space<vmem>>, vector<8x128xf32>
    tpu.vector_store %arg4[%c0_5, %c0_6], %5 {strides = array<i32>} : memref<8x128xf32, #tpu.memory_space<vmem>>, vector<8x128xf32>,
    return
  }
  func.func @transform_0(%arg0: i32) -> (i32, i32) {
    %c0_i32 = arith.constant 0 : i32
    %c0_i32_0 = arith.constant 0 : i32
    return %arg0, %c0_i32 : i32, i32
  }
  func.func @transform_1(%arg0: i32) -> (i32, i32) {
    %c0_i32 = arith.constant 0 : i32
    %c0_i32_0 = arith.constant 0 : i32
    %c0_i32_1 = arith.constant 0 : i32
    return %c0_i32, %c0_i32_0 : i32, i32
  }
  func.func @transform_2(%arg0: i32) -> (i32, i32) {
    %c0_i32 = arith.constant 0 : i32
    %c0_i32_0 = arith.constant 0 : i32
    %c0_i32_1 = arith.constant 0 : i32
    return %c0_i32, %c0_i32_0 : i32, i32
  }
  func.func @transform_3(%arg0: i32) -> (i32, i32) {
    %c0_i32 = arith.constant 0 : i32
    %c0_i32_0 = arith.constant 0 : i32
    return %arg0, %c0_i32 : i32, i32
  }
}

</mosaic_0001>

<bundles_post_ra>
// kernel: _lidar_conv_pallas.1
= control target key start
LH: loop header
LB: loop body
LE: loop exit
PB: predicated region body
PF: predicated region fallthrough
CT: control target
= control target key end

     0   :  { %8 = vsyncpa [#allocation3], 0  ;;  %s235_s12 = smov [#allocation2]   ;;  %s282_s0 = inlined_call_operand.vmem [shape: f32[8,128], index: 0, kind: input, shape index: {}]   ;;  %s283_s1 = inlined_call_operand.hbm [shape: f32[128,128], index: 1, kind: input, shape index: {}]   ;;  %s284_s2 = inlined_call_operand.vmem [shape: f32[1,128], index: 2, kind: input, shape index: {}]   ;;  %s285_s3 = inlined_call_operand.vmem [shape: f32[8,128], index: 3, kind: output, shape index: {}]  }
   0x1   :  { %s16_s13 = sshll.u32 %s235_s12, 4  ;;  %s211_s16 = scalar_lea.hbm %s283_s1, 2048  ;;  %s17_s13 = int_to_ptr.vmem [resolvable:$true] %s16_s13 }
   0x2   :  { %p212_p0 = scmp.ne.s32.totalorder %s283_s1, %s211_s16  ;;  %p215_p1 = scmp.lt.u32.totalorder %s211_s16, %s283_s1 }
   0x4   :  { %p217_p2 = pnand %p215_p1, %p212_p0 }
   0x6   :  { %220 = shalt.err (!%p217_p2)
}
   0x7   :  { %s221_s21 = scalar_lea.vmem %s17_s13, 2048  ;;  %p226_p4 = scmp.lt.s32.totalorder %s17_s13, %s17_s13 }
   0x8   :  { %p222_p3 = scmp.ne.s32.totalorder %s17_s13, %s221_s21  ;;  %p227_p5 = scmp.lt.s32.totalorder %s221_s21, %s221_s21 }
   0xa   :  { %p228_p6 = por %p227_p5, %p226_p4 }
   0xc   :  { %p229_p7 = pnand %p228_p6, %p222_p3 }
   0xe   :  { %232 = shalt.err (!%p229_p7)
}
   0xf   :  { %s236_s22 = smov 128   ;;  %s237_s23 = smov 8  }
  0x10   :  { %22 = dma.hbm_to_vmem [thread:$0]  %s283_s1, 2048, %s17_s13, [#allocation3], %s236_s22, %s236_s22, %s237_s23  }
  0x11   :  { %233 = dma.done.wait [#allocation3], 2048  }
  0x12   :  { %234 = vsyncadd [#allocation3], 4294965248  ;;  %v238_v0 = vmov 0.0|0.0   ;;  %vm239_vm0 = vmmov 0   ;;  %v240_v1 = vmov 0.0   ;;  %v29_v2 = vld [vmem:[#allocation2] sm:$0xff] }
  0x13   :  { %181 = vmatprep.subr.bf16.mxu0 %v238_v0  ;;  %178 = vmatprep.mubr.msk.f32.mxu0 %vm239_vm0, %v240_v1  ;;  %v30_v3 = vld [vmem:[#allocation2 + $0x8] sm:$0xff]  ;;  %v31_v4 = vld [vmem:[#allocation2 + $0x10] sm:$0xff]  ;;  %v32_v6 = vld [vmem:[#allocation2 + $0x18] sm:$0xff] }
  0x14   :  { %v182_v5 = vpack.c.bf16 %v30_v3, %v29_v2  ;;  %v185_v7 = vpack.c.bf16 %v32_v6, %v31_v4  ;;  %v33_v8 = vld [vmem:[#allocation2 + $0x20] sm:$0xff]  ;;  %v34_v9 = vld [vmem:[#allocation2 + $0x28] sm:$0xff]  ;;  %v35_v11 = vld [vmem:[#allocation2 + $0x30] sm:$0xff] }
  0x15   :  { %v188_v10 = vpack.c.bf16 %v34_v9, %v33_v8  ;;  %v36_v12 = vld [vmem:[#allocation2 + $0x38] sm:$0xff]  ;;  %v37_v14 = vld [vmem:[#allocation2 + $0x40] sm:$0xff]  ;;  %v38_v15 = vld [vmem:[#allocation2 + $0x48] sm:$0xff] }
  0x16   :  { %183 = vmatpush3.bf16.msra.mxu0 %v182_v5  ;;  %v191_v13 = vpack.c.bf16 %v36_v12, %v35_v11  ;;  %v194_v16 = vpack.c.bf16 %v38_v15, %v37_v14  ;;  %v39_v17 = vld [vmem:[#allocation2 + $0x50] sm:$0xff]  ;;  %v40_v18 = vld [vmem:[#allocation2 + $0x58] sm:$0xff]  ;;  %v41_v20 = vld [vmem:[#allocation2 + $0x60] sm:$0xff] }
  0x17   :  { %184 = vmatprep.subr.bf16.mxu0 %v238_v0  ;;  %v197_v19 = vpack.c.bf16 %v40_v18, %v39_v17  ;;  %v42_v21 = vld [vmem:[#allocation2 + $0x68] sm:$0xff]  ;;  %v43_v23 = vld [vmem:[#allocation2 + $0x70] sm:$0xff]  ;;  %v44_v24 = vld [vmem:[#allocation2 + $0x78] sm:$0xff] }
  0x18   :  { %v200_v22 = vpack.c.bf16 %v42_v21, %v41_v20  ;;  %v203_v25 = vpack.c.bf16 %v44_v24, %v43_v23  ;;  %v28_v26 = vld [vmem:[%s282_s0] sm:$0xff] }
  0x19   :  { %v128_v27 = vld [vmem:[%s284_s2] ss:$0 sm:$0xff] }
  0x1a   :  { %186 = vmatpush3.bf16.msra.mxu0 %v185_v7 }
  0x1b   :  { %187 = vmatprep.subr.bf16.mxu0 %v238_v0 }
  0x1e   :  { %189 = vmatpush3.bf16.msra.mxu0 %v188_v10 }
  0x1f   :  { %190 = vmatprep.subr.bf16.mxu0 %v238_v0 }
  0x22   :  { %192 = vmatpush3.bf16.msra.mxu0 %v191_v13 }
  0x23   :  { %193 = vmatprep.subr.bf16.mxu0 %v238_v0 }
  0x26   :  { %195 = vmatpush3.bf16.msra.mxu0 %v194_v16 }
  0x27   :  { %196 = vmatprep.subr.bf16.mxu0 %v238_v0 }
  0x2a   :  { %198 = vmatpush3.bf16.msra.mxu0 %v197_v19 }
  0x2b   :  { %199 = vmatprep.subr.bf16.mxu0 %v238_v0 }
  0x2e   :  { %201 = vmatpush3.bf16.msra.mxu0 %v200_v22 }
  0x2f   :  { %202 = vmatprep.subr.bf16.mxu0 %v238_v0 }
  0x32   :  { %204 = vmatpush3.bf16.msra.mxu0 %v203_v25 }
  0x35   :  { %179 = vmatmul.mubr.f32.vlgmr.msra.gmra.mrb[0].mxu0 %v28_v26 }
 0x108   :  { %v118_v28 = vpop.f32.mrb[0].mxu0 }
 0x109   :  { %v119_v29 = vadd.f32 %v128_v27, %v118_v28  ;;  %v180_v30 = vpop.f32.mrb[1].mxu0 }
 0x10b   :  { %122 = vst [vmem:[%s285_s3] sm:$0xff] %v119_v29 }
 0x10c   :  { %127 = vsyncpa [#allocation3], 1 }

</bundles_post_ra>
